<compile_context>
chip_gen: v7x
topology: tpu7x:2x2x1
jax: 0.10.0
libtpu: 0.0.40
codegen_flags: <defaults>
</compile_context>

<pallas_src>
import random
from dataclasses import dataclass
from typing import Any, Dict, List, Tuple

import jax
import jax.numpy as jnp
from jax.experimental import pallas as pl
from jax.experimental.pallas import tpu as pltpu

# ---- module-consistent sizes (config["feature_dim"] = 128) ------------------
FEATURE_DIM = 128          # embed dim (multiple of num_heads=8, lane aligned)
P_HID = 256                # pattern_recognizer hidden (hardcoded in module)
P_OUT = 128                # pattern_recognizer output (hardcoded in module)
I_HID = 256                # inference_network hidden (hardcoded in module)
NUM_HEADS = 8
HEAD_DIM = FEATURE_DIM // NUM_HEADS
MEM_CAPACITY = 64          # episodic memory slots (config "memory_size")
RETRIEVE_K = 5             # top-k retrieval, as in the PyTorch module
ATTN_ROWS = 8              # fixed (8,128)-aligned attention-memory tile (>= RETRIEVE_K)

PARAM_SHAPES = {
    "w1": (FEATURE_DIM, P_HID),            "b1": (1, P_HID),
    "w2": (P_HID, P_OUT),                  "b2": (1, P_OUT),
    "wq": (FEATURE_DIM, FEATURE_DIM),      "bq": (1, FEATURE_DIM),
    "wk": (FEATURE_DIM, FEATURE_DIM),      "bk": (1, FEATURE_DIM),
    "wv": (FEATURE_DIM, FEATURE_DIM),      "bv": (1, FEATURE_DIM),
    "wo": (FEATURE_DIM, FEATURE_DIM),      "bo": (1, FEATURE_DIM),
    "wi1": (P_OUT + FEATURE_DIM, I_HID),   "bi1": (1, I_HID),
    "wi2": (I_HID, FEATURE_DIM),           "bi2": (1, FEATURE_DIM),
}

# Slab layouts (all lane offsets multiples of 128 -> free static slices):
#   w128 (128, 1280) bf16 = [ w1 0:256 | wq*s 256:384 | wk 384:512 | wv 512:640 |
#                             (wo@wi1_bot) 640:896 | wi1_top 896:1152 | head_mask 1152:1280 ]
#   w256 (256, 256)  bf16 = [ w2 0:128 | wi2 128:256 ]          (manual-DMA'd)
#   bias (1, 1152)   f32  = [ b1 0:256 | bq*s 256:384 | bk 384:512 | bv 512:640 |
#                             b2 640:768 | (bo@wi1_bot+bi1) 768:1024 | bi2 1024:1152 ]


# ------------------------------- Pallas kernel -------------------------------
def reasoning_kernel(len_ref, x_ref, mem_ref, w128_ref, bias_ref, w256_hbm,
                     thought_ref, patterns_ref, w256_vmem, dma_sem):
    f32, bf16 = jnp.float32, jnp.bfloat16

    # Kick off the (w2 | wi2) slab DMA immediately; it is only needed at the end
    # (patterns / h2 / thought), so its 128 KB hide under the attention block.
    w256_cp = pltpu.make_async_copy(w256_hbm, w256_vmem, dma_sem)
    w256_cp.start()

    length = len_ref[0]                    # valid memory rows (SMEM scalar)
    x = x_ref[...]                         # (1, 128)  bf16
    mem = mem_ref[...]                     # (8, 128)  bf16, zero-padded past `length`

    def mxu(a, w):
        # bf16 operands on the MXU, f32 accumulation
        return jnp.dot(a.astype(bf16), w, preferred_element_type=f32)

    # ---- fused x projections: [h1_pre | q_scaled] = x @ [w1 | wq*s] ----------
    xp = mxu(x, w128_ref[:, 0:384])                               # (1, 384)
    h1 = jnp.maximum(xp[:, 0:256] + bias_ref[:, 0:256], 0.0)      # + b1, ReLU (f32)
    q = xp[:, 256:384] + bias_ref[:, 256:384]                     # + bq (scale pre-folded)

    # ---- fused memory projections: [k | v] = mem @ [wk | wv] -----------------
    kv = mxu(mem, w128_ref[:, 384:640])                           # (8, 256)
    k = kv[:, 0:128] + bias_ref[:, 384:512]
    v = kv[:, 128:256] + bias_ref[:, 512:640]

    # ---- multi-head attention, lane-dense (head mask baked into the slab) ----
    qk = (k * q).astype(bf16)                                     # (8, 128)
    # scores[j, e] = per-head score of memory row j, replicated across the head's
    # 16 lanes (block-diagonal bf16 mask streamed straight from VMEM to the MXU)
    scores = mxu(qk, w128_ref[:, 1152:1280])                      # (8, 128)
    ridx = jax.lax.broadcasted_iota(jnp.int32, (ATTN_ROWS, FEATURE_DIM), 0)
    scores = jnp.where(ridx < length, scores, -1e30)              # mask padded rows
    m = jnp.max(scores, axis=0, keepdims=True)                    # (1, 128)
    e = jnp.exp(scores - m)                                       # (8, 128)
    denom = jnp.sum(e, axis=0, keepdims=True)                     # (1, 128)
    # normalization folded after the reduction: one EUP reciprocal + one (1,128) mul
    ctx = jnp.sum(e * v, axis=0, keepdims=True) * pl.reciprocal(denom, approx=True)

    # ctx contribution to h2 via pre-fused (wo @ wi1_bot) — still w128-only work,
    # so it also overlaps the in-flight w256 DMA.
    h2_ctx = mxu(ctx, w128_ref[:, 640:896])                       # (1, 256)

    # ---- wait for (w2 | wi2), then finish pattern/inference path --------------
    w256_cp.wait()
    patterns = jnp.maximum(mxu(h1, w256_vmem[:, 0:128]) + bias_ref[:, 640:768], 0.0)
    patterns_ref[...] = patterns                                  # (1, 128)

    h2_pat = mxu(patterns, w128_ref[:, 896:1152])                 # (1, 256)
    h2 = jnp.maximum(h2_pat + h2_ctx + bias_ref[:, 768:1024], 0.0)
    thought_ref[...] = jnp.tanh(mxu(h2, w256_vmem[:, 128:256]) + bias_ref[:, 1024:1152])


def _reasoning_pallas(length, x_row, mem_rows, w128, bias, w256):
    return pl.pallas_call(
        reasoning_kernel,
        out_shape=(
            jax.ShapeDtypeStruct((1, FEATURE_DIM), jnp.float32),   # thought
            jax.ShapeDtypeStruct((1, P_OUT), jnp.float32),         # patterns
        ),
        in_specs=[
            pl.BlockSpec(memory_space=pltpu.MemorySpace.SMEM),     # length scalar (1,)
            pl.BlockSpec(memory_space=pltpu.MemorySpace.VMEM),     # x       (1,128) bf16
            pl.BlockSpec(memory_space=pltpu.MemorySpace.VMEM),     # mem     (8,128) bf16
            pl.BlockSpec(memory_space=pltpu.MemorySpace.VMEM),     # w128 slab (bf16)
            pl.BlockSpec(memory_space=pltpu.MemorySpace.VMEM),     # bias slab (f32)
            pl.BlockSpec(memory_space=pl.ANY),                     # w256 slab (HBM, manual DMA)
        ],
        out_specs=(
            pl.BlockSpec(memory_space=pltpu.MemorySpace.VMEM),
            pl.BlockSpec(memory_space=pltpu.MemorySpace.VMEM),
        ),
        scratch_shapes=[
            pltpu.VMEM((P_HID, 2 * P_OUT), jnp.bfloat16),          # w256 landing buffer
            pltpu.SemaphoreType.DMA(()),
        ],
    )(length, x_row, mem_rows, w128, bias, w256)


# ---------------- one full reasoning step, fully device-side ------------------
@jax.jit
def _step_jit(memory_matrix, num_memories, write_index, x, w128, w256, bias):
    """Retrieve (cosine top-k) -> pad -> Pallas kernel -> store, in one jit."""
    # episodic retrieval on the device-resident memory matrix
    qn = jnp.linalg.norm(x)
    norms = jnp.linalg.norm(memory_matrix, axis=1)
    sims = (memory_matrix @ x) / (norms * qn + 1e-8)
    valid = jnp.arange(MEM_CAPACITY) < num_memories
    sims = jnp.where(valid, sims, -jnp.inf)
    _, top_idx = jax.lax.top_k(sims, RETRIEVE_K)
    gathered = memory_matrix[top_idx]                              # (5, 128)

    zeros = jnp.zeros((ATTN_ROWS, FEATURE_DIM), jnp.float32)
    mem_from_memory = zeros.at[:RETRIEVE_K].set(gathered)
    mem_from_input = zeros.at[0].set(x)                            # empty-memory fallback
    mem_rows = jnp.where(num_memories > 0, mem_from_memory, mem_from_input)
    length = jnp.where(num_memories > 0,
                       jnp.minimum(num_memories, RETRIEVE_K), 1).astype(jnp.int32)

    thought, patterns = _reasoning_pallas(
        length.reshape(1),
        x.reshape(1, FEATURE_DIM).astype(jnp.bfloat16),
        mem_rows.astype(jnp.bfloat16),
        w128, bias, w256)

    salience = jnp.max(jnp.abs(thought))
    new_memory_matrix = memory_matrix.at[write_index].set(thought.reshape(FEATURE_DIM))
    return thought, patterns, salience, new_memory_matrix


# ------------------------- pure-JAX reference (sanity) ------------------------
def reference_forward(x_row, mem_rows, params):
    """Standard (unfused) per-head multi-head-attention formulation with bf16
    weights / f32 accumulation. The kernel additionally pre-fuses wo@wi1_bot and
    uses an approximate softmax reciprocal, so the thought check uses a slightly
    looser tolerance than the patterns check."""
    wb = {k: v.astype(jnp.bfloat16) for k, v in params.items() if k.startswith("w")}

    def mxu(a, w):
        return jnp.dot(a.astype(jnp.bfloat16), w, preferred_element_type=jnp.float32)

    relu = lambda a: jnp.maximum(a, 0.0)
    h1 = relu(mxu(x_row, wb["w1"]) + params["b1"])
    patterns = relu(mxu(h1, wb["w2"]) + params["b2"])
    q = mxu(x_row, wb["wq"]) + params["bq"]
    k = mxu(mem_rows, wb["wk"]) + params["bk"]
    v = mxu(mem_rows, wb["wv"]) + params["bv"]
    qh = q.reshape(1, NUM_HEADS, HEAD_DIM).transpose(1, 0, 2)
    kh = k.reshape(-1, NUM_HEADS, HEAD_DIM).transpose(1, 0, 2)
    vh = v.reshape(-1, NUM_HEADS, HEAD_DIM).transpose(1, 0, 2)
    s = jnp.einsum("hqd,hkd->hqk", qh, kh) / (HEAD_DIM ** 0.5)
    p = jax.nn.softmax(s, axis=-1)
    ctx = jnp.einsum("hqk,hkd->hqd", p, vh).transpose(1, 0, 2).reshape(1, FEATURE_DIM)
    attended = mxu(ctx, wb["wo"]) + params["bo"]
    inf_in = jnp.concatenate([patterns, attended], axis=-1)
    h2 = relu(mxu(inf_in, wb["wi1"]) + params["bi1"])
    out = jnp.tanh(mxu(h2, wb["wi2"]) + params["bi2"])
    return out, patterns, jnp.max(jnp.abs(out))


# ----------------------------- params / packing -------------------------------
def init_params(key):
    params = {}
    for name, shape in PARAM_SHAPES.items():
        key, sub = jax.random.split(key)
        if name.startswith("w"):
            params[name] = jax.random.normal(sub, shape, jnp.float32) / (shape[0] ** 0.5)
        else:
            params[name] = jax.random.normal(sub, shape, jnp.float32) * 0.01
    return params


def pack_params(params):
    """Pack into 2 bf16 weight slabs + 1 f32 bias slab, with the attention scale
    folded into wq/bq, wo pre-fused into wi1's bottom half, and the block-diagonal
    head mask baked into the w128 slab."""
    scale = 1.0 / (float(HEAD_DIM) ** 0.5)
    wq_s = params["wq"] * scale
    bq_s = params["bq"] * scale
    wi1_top = params["wi1"][:P_OUT, :]                       # (128, 256)
    wi1_bot = params["wi1"][P_OUT:, :]                       # (128, 256)
    w_fused = params["wo"] @ wi1_bot                         # (128, 256)  f32 product
    b_fused = params["bo"] @ wi1_bot + params["bi1"]         # (1, 256)
    hrow = jnp.arange(FEATURE_DIM)[:, None] // HEAD_DIM
    hcol = jnp.arange(FEATURE_DIM)[None, :] // HEAD_DIM
    head_mask = (hrow == hcol).astype(jnp.float32)           # (128, 128), exact in bf16

    w128 = jnp.concatenate(
        [params["w1"], wq_s, params["wk"], params["wv"], w_fused, wi1_top, head_mask],
        axis=1).astype(jnp.bfloat16)                          # (128, 1280)
    w256 = jnp.concatenate(
        [params["w2"], params["wi2"]], axis=1).astype(jnp.bfloat16)   # (256, 256)
    bias = jnp.concatenate(
        [params["b1"], bq_s, params["bk"], params["bv"], params["b2"], b_fused,
         params["bi2"]], axis=1).astype(jnp.float32)          # (1, 1152)
    return {"w128": w128, "w256": w256, "bias": bias}


# ----------------------------- host-side glue ---------------------------------
@dataclass
class Thought:
    content: jnp.ndarray
    salience: float
    associations: List[str]
    timestamp: float


class ReasoningModulePallas:
    """Pallas-backed reimplementation of ReasoningModule.forward / process_thought."""

    def __init__(self, config: Dict[str, Any] = None, key=jax.random.PRNGKey(42)):
        self.config = config or {}
        self.feature_dim = self.config.get("feature_dim", FEATURE_DIM)
        assert self.feature_dim == FEATURE_DIM, "kernel compiled for feature_dim=128"
        self.memory_size = self.config.get("memory_size", MEM_CAPACITY)
        assert self.memory_size == MEM_CAPACITY, "jit step compiled for fixed memory_size"
        self.params = init_params(key)            # f32 masters (reference / export)
        self.packed = pack_params(self.params)    # bf16 weight slabs + f32 bias slab
        # Episodic memory: matrix is device-resident (participates in retrieval);
        # the Thought objects below are host-side metadata only.
        self.memory_matrix = jnp.zeros((MEM_CAPACITY, FEATURE_DIM), jnp.float32)
        self.memories: List[Thought] = []
        self.current_index = 0
        random.seed(0)

    def process_thought(self, current_input, working_memory) -> Tuple[Thought, Dict[str, Any]]:
        x = jnp.asarray(current_input, jnp.float32).reshape(FEATURE_DIM)
        num = min(len(self.memories), MEM_CAPACITY)
        if self.current_index >= MEM_CAPACITY:
            self.current_index = 0

        thought_content, patterns, salience, new_mem = _step_jit(
            self.memory_matrix, jnp.int32(num), jnp.int32(self.current_index),
            x, self.packed["w128"], self.packed["w256"], self.packed["bias"])

        thought = Thought(
            content=thought_content.reshape(FEATURE_DIM),
            salience=float(salience),
            associations=[f"memory_{i}" for i in range(min(RETRIEVE_K, num))],
            timestamp=float(random.random()),
        )
        working_memory["last_thought"] = thought
        working_memory["active_patterns"] = patterns.reshape(P_OUT)
        # store(): the matrix write already happened inside the jitted step
        self.memory_matrix = new_mem
        self.memories.append(thought)
        self.current_index += 1
        return thought, working_memory

    def forward(self, sensory_input, working_memory):
        return self.process_thought(sensory_input, working_memory)


# ----------------------------------- main -------------------------------------
if __name__ == "__main__":
    key = jax.random.PRNGKey(0)
    k_in, k_param = jax.random.split(key)

    module = ReasoningModulePallas(
        config={"feature_dim": FEATURE_DIM, "memory_size": MEM_CAPACITY}, key=k_param)
    sensory_input = jax.random.normal(k_in, (FEATURE_DIM,), jnp.float32)

    working_memory: Dict[str, Any] = {}
    thought, working_memory = module.forward(sensory_input, working_memory)
    jax.block_until_ready(thought.content)

    # Sanity: fresh module -> attention key/value memory is the input itself (S=1).
    x_row = sensory_input.reshape(1, FEATURE_DIM)
    ref_out, ref_pat, ref_sal = reference_forward(x_row, x_row, module.params)
    assert jnp.allclose(working_memory["active_patterns"], ref_pat.reshape(-1),
                        atol=2e-3, rtol=2e-3), "patterns mismatch"
    # thought goes through the pre-fused wo@wi1 weight and the approx reciprocal,
    # so allow a slightly looser (still tight) tolerance than the reference's
    # two-stage bf16 rounding.
    assert jnp.allclose(thought.content, ref_out.reshape(-1),
                        atol=3e-2, rtol=3e-2), "thought mismatch"
    assert abs(thought.salience - float(ref_sal)) < 5e-2, "salience mismatch"

    # Second thought: episodic memory now non-empty (different valid length); the
    # same compiled kernel / jit step is reused (fixed shapes + SMEM length scalar).
    thought2, working_memory = module.forward(sensory_input * 0.5, working_memory)
    jax.block_until_ready(thought2.content)

    print("KERNEL_OK")
</pallas_src>

<mosaic_0001>
module attributes {stable_mosaic.version = 11 : i64} {
  func.func @reasoning_kernel(%arg0: memref<1xi32, #tpu.memory_space<smem>>, %arg1: memref<1x128xbf16, #tpu.memory_space<vmem>>, %arg2: memref<8x128xbf16, #tpu.memory_space<vmem>>, %arg3: memref<128x1280xbf16, #tpu.memory_space<vmem>>, %arg4: memref<1x1152xf32, #tpu.memory_space<vmem>>, %arg5: memref<256x256xbf16, #tpu.memory_space<any>>, %arg6: memref<1x128xf32, #tpu.memory_space<vmem>>, %arg7: memref<1x128xf32, #tpu.memory_space<vmem>>, %arg8: memref<256x256xbf16, #tpu.memory_space<vmem>>, %arg9: memref<!tpu.dma_semaphore, #tpu.memory_space<semaphore_mem>>) attributes {dimension_semantics = [], scalar_prefetch = 0 : i64, scratch_operands = 2 : i64, tpu.core_type = #tpu.core_type<tc>} {
    tpu.enqueue_dma source(%arg5 : memref<256x256xbf16, #tpu.memory_space<any>>) target(%arg8 : memref<256x256xbf16, #tpu.memory_space<vmem>>) target_semaphore(%arg9 : memref<!tpu.dma_semaphore, #tpu.memory_space<semaphore_mem>>)
    %c0 = arith.constant 0 : index
    %0 = memref.load %arg0[%c0] : memref<1xi32, #tpu.memory_space<smem>>
    %c0_0 = arith.constant 0 : index
    %c0_1 = arith.constant 0 : index
    %1 = vector.load %arg1[%c0_0, %c0_1] : memref<1x128xbf16, #tpu.memory_space<vmem>>, vector<1x128xbf16>
    %c0_2 = arith.constant 0 : index
    %c0_3 = arith.constant 0 : index
    %2 = vector.load %arg2[%c0_2, %c0_3] : memref<8x128xbf16, #tpu.memory_space<vmem>>, vector<8x128xbf16>
    %c0_4 = arith.constant 0 : index
    %c0_5 = arith.constant 0 : index
    %3 = vector.load %arg3[%c0_4, %c0_5] : memref<128x1280xbf16, #tpu.memory_space<vmem>>, vector<128x384xbf16>
    %cst = arith.constant dense<0.000000e+00> : vector<1x384xf32>
    %4 = tpu.matmul %1, %3, %cst {dimension_numbers = #tpu.dot_dimension_numbers<[1], [0], [0], [1], [0, 0, 1, 1], [], []>} : vector<1x128xbf16>, vector<128x384xbf16>, vector<1x384xf32> -> vector<1x384xf32>
    %5 = vector.extract_strided_slice %4 {offsets = [0, 0], sizes = [1, 256], strides = [1, 1]} : vector<1x384xf32> to vector<1x256xf32>
    %c0_6 = arith.constant 0 : index
    %c0_7 = arith.constant 0 : index
    %6 = vector.load %arg4[%c0_6, %c0_7] : memref<1x1152xf32, #tpu.memory_space<vmem>>, vector<1x256xf32>
    %7 = arith.addf %5, %6 : vector<1x256xf32>
    %cst_8 = arith.constant 0.000000e+00 : f32
    %8 = vector.broadcast %cst_8 : f32 to vector<1x256xf32>
    %9 = arith.maximumf %7, %8 : vector<1x256xf32>
    %10 = vector.extract_strided_slice %4 {offsets = [0, 256], sizes = [1, 128], strides = [1, 1]} : vector<1x384xf32> to vector<1x128xf32>
    %c0_9 = arith.constant 0 : index
    %c256 = arith.constant 256 : index
    %11 = vector.load %arg4[%c0_9, %c256] : memref<1x1152xf32, #tpu.memory_space<vmem>>, vector<1x128xf32>
    %12 = arith.addf %10, %11 : vector<1x128xf32>
    %c0_10 = arith.constant 0 : index
    %c384 = arith.constant 384 : index
    %13 = vector.load %arg3[%c0_10, %c384] : memref<128x1280xbf16, #tpu.memory_space<vmem>>, vector<128x256xbf16>
    %cst_11 = arith.constant dense<0.000000e+00> : vector<8x256xf32>
    %14 = tpu.matmul %2, %13, %cst_11 {dimension_numbers = #tpu.dot_dimension_numbers<[1], [0], [0], [1], [0, 0, 1, 1], [], []>} : vector<8x128xbf16>, vector<128x256xbf16>, vector<8x256xf32> -> vector<8x256xf32>
    %15 = vector.extract_strided_slice %14 {offsets = [0, 0], sizes = [8, 128], strides = [1, 1]} : vector<8x256xf32> to vector<8x128xf32>
    %c0_12 = arith.constant 0 : index
    %c384_13 = arith.constant 384 : index
    %16 = vector.load %arg4[%c0_12, %c384_13] : memref<1x1152xf32, #tpu.memory_space<vmem>>, vector<1x128xf32>
    %17 = vector.broadcast %16 : vector<1x128xf32> to vector<8x128xf32>
    %18 = arith.addf %15, %17 : vector<8x128xf32>
    %19 = vector.extract_strided_slice %14 {offsets = [0, 128], sizes = [8, 128], strides = [1, 1]} : vector<8x256xf32> to vector<8x128xf32>
    %c0_14 = arith.constant 0 : index
    %c512 = arith.constant 512 : index
    %20 = vector.load %arg4[%c0_14, %c512] : memref<1x1152xf32, #tpu.memory_space<vmem>>, vector<1x128xf32>
    %21 = vector.broadcast %20 : vector<1x128xf32> to vector<8x128xf32>
    %22 = arith.addf %19, %21 : vector<8x128xf32>
    %23 = vector.broadcast %12 : vector<1x128xf32> to vector<8x128xf32>
    %24 = arith.mulf %18, %23 : vector<8x128xf32>
    %25 = arith.truncf %24 : vector<8x128xf32> to vector<8x128xbf16>
    %c0_15 = arith.constant 0 : index
    %c1152 = arith.constant 1152 : index
    %26 = vector.load %arg3[%c0_15, %c1152] : memref<128x1280xbf16, #tpu.memory_space<vmem>>, vector<128x128xbf16>
    %cst_16 = arith.constant dense<0.000000e+00> : vector<8x128xf32>
    %27 = tpu.matmul %25, %26, %cst_16 {dimension_numbers = #tpu.dot_dimension_numbers<[1], [0], [0], [1], [0, 0, 1, 1], [], []>} : vector<8x128xbf16>, vector<128x128xbf16>, vector<8x128xf32> -> vector<8x128xf32>
    %28 = tpu.iota {dimensions = array<i32: 0>} : vector<8x128xi32>
    %29 = vector.broadcast %0 : i32 to vector<8x128xi32>
    %30 = arith.cmpi slt, %28, %29 : vector<8x128xi32>
    %cst_17 = arith.constant -1.000000e+30 : f32
    %31 = vector.broadcast %cst_17 : f32 to vector<8x128xf32>
    %32 = arith.select %30, %27, %31 : vector<8x128xi1>, vector<8x128xf32>
    %cst_18 = arith.constant dense<0xFF800000> : vector<128xf32>
    %33 = vector.multi_reduction <maximumf>, %32, %cst_18 [0] : vector<8x128xf32> to vector<128xf32>
    %34 = vector.shape_cast %33 : vector<128xf32> to vector<1x128xf32>
    %35 = vector.broadcast %34 : vector<1x128xf32> to vector<8x128xf32>
    %36 = arith.subf %32, %35 : vector<8x128xf32>
    %37 = math.exp %36 : vector<8x128xf32>
    %cst_19 = arith.constant dense<0.000000e+00> : vector<128xf32>
    %38 = vector.multi_reduction <add>, %37, %cst_19 [0] : vector<8x128xf32> to vector<128xf32>
    %39 = vector.shape_cast %38 : vector<128xf32> to vector<1x128xf32>
    %40 = arith.mulf %37, %22 : vector<8x128xf32>
    %cst_20 = arith.constant dense<0.000000e+00> : vector<128xf32>
    %41 = vector.multi_reduction <add>, %40, %cst_20 [0] : vector<8x128xf32> to vector<128xf32>
    %42 = vector.shape_cast %41 : vector<128xf32> to vector<1x128xf32>
    %43 = tpu.reciprocal %39 {approx = true} : vector<1x128xf32> -> vector<1x128xf32>
    %44 = arith.mulf %42, %43 : vector<1x128xf32>
    %c0_21 = arith.constant 0 : index
    %c640 = arith.constant 640 : index
    %45 = vector.load %arg3[%c0_21, %c640] : memref<128x1280xbf16, #tpu.memory_space<vmem>>, vector<128x256xbf16>
    %46 = arith.truncf %44 : vector<1x128xf32> to vector<1x128xbf16>
    %cst_22 = arith.constant dense<0.000000e+00> : vector<1x256xf32>
    %47 = tpu.matmul %46, %45, %cst_22 {dimension_numbers = #tpu.dot_dimension_numbers<[1], [0], [0], [1], [0, 0, 1, 1], [], []>} : vector<1x128xbf16>, vector<128x256xbf16>, vector<1x256xf32> -> vector<1x256xf32>
    tpu.wait_dma2 semaphore(%arg9 : memref<!tpu.dma_semaphore, #tpu.memory_space<semaphore_mem>>) src(%arg5 : memref<256x256xbf16, #tpu.memory_space<any>>) dst(%arg8 : memref<256x256xbf16, #tpu.memory_space<vmem>>)
    %c0_23 = arith.constant 0 : index
    %c0_24 = arith.constant 0 : index
    %48 = vector.load %arg8[%c0_23, %c0_24] : memref<256x256xbf16, #tpu.memory_space<vmem>>, vector<256x128xbf16>
    %49 = arith.truncf %9 : vector<1x256xf32> to vector<1x256xbf16>
    %cst_25 = arith.constant dense<0.000000e+00> : vector<1x128xf32>
    %50 = tpu.matmul %49, %48, %cst_25 {dimension_numbers = #tpu.dot_dimension_numbers<[1], [0], [0], [1], [0, 0, 1, 1], [], []>} : vector<1x256xbf16>, vector<256x128xbf16>, vector<1x128xf32> -> vector<1x128xf32>
    %c0_26 = arith.constant 0 : index
    %c640_27 = arith.constant 640 : index
    %51 = vector.load %arg4[%c0_26, %c640_27] : memref<1x1152xf32, #tpu.memory_space<vmem>>, vector<1x128xf32>
    %52 = arith.addf %50, %51 : vector<1x128xf32>
    %cst_28 = arith.constant 0.000000e+00 : f32
    %53 = vector.broadcast %cst_28 : f32 to vector<1x128xf32>
    %54 = arith.maximumf %52, %53 : vector<1x128xf32>
    %c0_29 = arith.constant 0 : index
    %c0_30 = arith.constant 0 : index
    %55 = vector.load %arg7[%c0_29, %c0_30] : memref<1x128xf32, #tpu.memory_space<vmem>>, vector<1x128xf32>
    tpu.vector_store %arg7[%c0_29, %c0_30], %54 {strides = array<i32>} : memref<1x128xf32, #tpu.memory_space<vmem>>, vector<1x128xf32>,
    %c0_31 = arith.constant 0 : index
    %c896 = arith.constant 896 : index
    %56 = vector.load %arg3[%c0_31, %c896] : memref<128x1280xbf16, #tpu.memory_space<vmem>>, vector<128x256xbf16>
    %57 = arith.truncf %54 : vector<1x128xf32> to vector<1x128xbf16>
    %cst_32 = arith.constant dense<0.000000e+00> : vector<1x256xf32>
    %58 = tpu.matmul %57, %56, %cst_32 {dimension_numbers = #tpu.dot_dimension_numbers<[1], [0], [0], [1], [0, 0, 1, 1], [], []>} : vector<1x128xbf16>, vector<128x256xbf16>, vector<1x256xf32> -> vector<1x256xf32>
    %59 = arith.addf %58, %47 : vector<1x256xf32>
    %c0_33 = arith.constant 0 : index
    %c768 = arith.constant 768 : index
    %60 = vector.load %arg4[%c0_33, %c768] : memref<1x1152xf32, #tpu.memory_space<vmem>>, vector<1x256xf32>
    %61 = arith.addf %59, %60 : vector<1x256xf32>
    %cst_34 = arith.constant 0.000000e+00 : f32
    %62 = vector.broadcast %cst_34 : f32 to vector<1x256xf32>
    %63 = arith.maximumf %61, %62 : vector<1x256xf32>
    %c0_35 = arith.constant 0 : index
    %c128 = arith.constant 128 : index
    %64 = vector.load %arg8[%c0_35, %c128] : memref<256x256xbf16, #tpu.memory_space<vmem>>, vector<256x128xbf16>
    %65 = arith.truncf %63 : vector<1x256xf32> to vector<1x256xbf16>
    %cst_36 = arith.constant dense<0.000000e+00> : vector<1x128xf32>
    %66 = tpu.matmul %65, %64, %cst_36 {dimension_numbers = #tpu.dot_dimension_numbers<[1], [0], [0], [1], [0, 0, 1, 1], [], []>} : vector<1x256xbf16>, vector<256x128xbf16>, vector<1x128xf32> -> vector<1x128xf32>
    %c0_37 = arith.constant 0 : index
    %c1024 = arith.constant 1024 : index
    %67 = vector.load %arg4[%c0_37, %c1024] : memref<1x1152xf32, #tpu.memory_space<vmem>>, vector<1x128xf32>
    %68 = arith.addf %66, %67 : vector<1x128xf32>
    %69 = math.tanh %68 : vector<1x128xf32>
    %c0_38 = arith.constant 0 : index
    %c0_39 = arith.constant 0 : index
    %70 = vector.load %arg6[%c0_38, %c0_39] : memref<1x128xf32, #tpu.memory_space<vmem>>, vector<1x128xf32>
    tpu.vector_store %arg6[%c0_38, %c0_39], %69 {strides = array<i32>} : memref<1x128xf32, #tpu.memory_space<vmem>>, vector<1x128xf32>,
    return
  }
}

</mosaic_0001>

<bundles_post_ra>
// kernel: _step_jit.1
= control target key start
LH: loop header
LB: loop body
LE: loop exit
PB: predicated region body
PF: predicated region fallthrough
CT: control target
= control target key end

     0   :  { %14 = vsyncpa [#allocation6], 0  ;;  %s2022_s0 = inlined_call_operand.<no memory space> [shape: s32[1], index: 0, kind: input, shape index: {}]   ;;  %s2023_s1 = inlined_call_operand.vmem [shape: bf16[1,128], index: 1, kind: input, shape index: {}]   ;;  %s2024_s2 = inlined_call_operand.vmem [shape: bf16[8,128], index: 2, kind: input, shape index: {}]   ;;  %s2025_s3 = inlined_call_operand.hbm [shape: bf16[128,1280], index: 3, kind: input, shape index: {}]   ;;  %s2026_s4 = inlined_call_operand.vmem [shape: f32[1,1152], index: 4, kind: input, shape index: {}]   ;;  %s2027_s5 = inlined_call_operand.vmem [shape: bf16[256,256], index: 5, kind: input, shape index: {}]   ;;  %s2028_s6 = inlined_call_operand.vmem [shape: f32[1,128], index: 6, kind: output, shape index: {0}]   ;;  %s2029_s7 = inlined_call_operand.hbm [shape: f32[1,128], index: 7, kind: output, shape index: {1}]  }
   0x1   :  { %15 = vsyncpa [#allocation7], 0  ;;  %s1715_s24 = smov [#allocation5]   ;;  %s1665_s28 = scalar_lea.hbm %s2025_s3, 10240 }
   0x2   :  { %s27_s25 = sshll.u32 %s1715_s24, 4  ;;  %p1666_p0 = scmp.ne.s32.totalorder %s2025_s3, %s1665_s28  ;;  %s28_s25 = int_to_ptr.vmem [resolvable:$true] %s27_s25 }
   0x3   :  { %p1669_p1 = scmp.lt.u32.totalorder %s1665_s28, %s2025_s3 }
   0x5   :  { %p1671_p2 = pnand %p1669_p1, %p1666_p0 }
   0x7   :  { %1674 = shalt.err (!%p1671_p2)
}
   0x8   :  { %s1675_s10 = scalar_lea.vmem %s28_s25, 10240  ;;  %p1680_p4 = scmp.lt.s32.totalorder %s28_s25, %s28_s25 }
   0x9   :  { %p1676_p3 = scmp.ne.s32.totalorder %s28_s25, %s1675_s10  ;;  %p1681_p5 = scmp.lt.s32.totalorder %s1675_s10, %s1675_s10 }
   0xb   :  { %p1682_p6 = por %p1681_p5, %p1680_p4 }
   0xd   :  { %p1683_p7 = pnand %p1682_p6, %p1676_p3 }
   0xf   :  { %1686 = shalt.err (!%p1683_p7)
}
  0x10   :  { %s1716_s11 = smov 640   ;;  %s1717_s12 = smov 40  }
  0x11   :  { %33 = dma.hbm_to_vmem [thread:$0]  %s2025_s3, 10240, %s28_s25, [#allocation6], %s1716_s11, %s1716_s11, %s1717_s12  }
  0x12   :  { %1709 = dma.done.wait [#allocation6], 10240  }
  0x13   :  { %1710 = vsyncadd [#allocation6], 4294957056  ;;  %v57_v0 = vld [vmem:[%s2027_s5] sm:$0xf]  ;;  %v59_v1 = vld [vmem:[%s2027_s5 + $0x8] sm:$0xf] }
  0x14   :  { %v61_v2 = vld [vmem:[%s2027_s5 + $0x4] sm:$0xf]  ;;  %58 = vst [vmem:[#allocation2] sm:$0xf] %v57_v0  ;;  %60 = vst [vmem:[#allocation2 + $0x4] sm:$0xf] %v59_v1 }
  0x15   :  { %62 = vst [vmem:[#allocation2 + $0x8] sm:$0xf] %v61_v2  ;;  %v63_v3 = vld [vmem:[%s2027_s5 + $0xc] sm:$0xff]   ;;  %v67_v4 = vld [vmem:[%s2027_s5 + $0x18] sm:$0xf]  ;;  %v71_v6 = vld [vmem:[%s2027_s5 + $0x1c] sm:$0xff]  }
  0x16   :  { %v69_v5 = vld [vmem:[%s2027_s5 + $0x14] sm:$0xf]  ;;  %64 = vst [vmem:[#allocation2 + $0xc] sm:$0xff] %v63_v3   ;;  %68 = vst [vmem:[#allocation2 + $0x14] sm:$0xf] %v67_v4  ;;  %v79_v9 = vld [vmem:[%s2027_s5 + $0x2c] sm:$0xff]  }
  0x17   :  { %70 = vst [vmem:[#allocation2 + $0x18] sm:$0xf] %v69_v5  ;;  %v75_v7 = vld [vmem:[%s2027_s5 + $0x28] sm:$0xf]  ;;  %v77_v8 = vld [vmem:[%s2027_s5 + $0x24] sm:$0xf] }
  0x18   :  { %72 = vst [vmem:[#allocation2 + $0x1c] sm:$0xff] %v71_v6   ;;  %76 = vst [vmem:[#allocation2 + $0x24] sm:$0xf] %v75_v7  ;;  %v83_v10 = vld [vmem:[%s2027_s5 + $0x38] sm:$0xf]  ;;  %v87_v12 = vld [vmem:[%s2027_s5 + $0x3c] sm:$0xff]  }
  0x19   :  { %78 = vst [vmem:[#allocation2 + $0x28] sm:$0xf] %v77_v8  ;;  %v85_v11 = vld [vmem:[%s2027_s5 + $0x34] sm:$0xf]  ;;  %80 = vst [vmem:[#allocation2 + $0x2c] sm:$0xff] %v79_v9   ;;  %v95_v15 = vld [vmem:[%s2027_s5 + $0x4c] sm:$0xff]  }
  0x1a   :  { %84 = vst [vmem:[#allocation2 + $0x34] sm:$0xf] %v83_v10  ;;  %86 = vst [vmem:[#allocation2 + $0x38] sm:$0xf] %v85_v11  ;;  %v91_v13 = vld [vmem:[%s2027_s5 + $0x48] sm:$0xf] }
  0x1b   :  { %v93_v14 = vld [vmem:[%s2027_s5 + $0x44] sm:$0xf]  ;;  %88 = vst [vmem:[#allocation2 + $0x3c] sm:$0xff] %v87_v12   ;;  %92 = vst [vmem:[#allocation2 + $0x44] sm:$0xf] %v91_v13  ;;  %v103_v18 = vld [vmem:[%s2027_s5 + $0x5c] sm:$0xff]  }
  0x1c   :  { %94 = vst [vmem:[#allocation2 + $0x48] sm:$0xf] %v93_v14  ;;  %v99_v16 = vld [vmem:[%s2027_s5 + $0x58] sm:$0xf]  ;;  %v101_v17 = vld [vmem:[%s2027_s5 + $0x54] sm:$0xf] }
  0x1d   :  { %96 = vst [vmem:[#allocation2 + $0x4c] sm:$0xff] %v95_v15   ;;  %100 = vst [vmem:[#allocation2 + $0x54] sm:$0xf] %v99_v16  ;;  %v107_v19 = vld [vmem:[%s2027_s5 + $0x68] sm:$0xf]  ;;  %v111_v21 = vld [vmem:[%s2027_s5 + $0x6c] sm:$0xff]  }
  0x1e   :  { %102 = vst [vmem:[#allocation2 + $0x58] sm:$0xf] %v101_v17  ;;  %v109_v20 = vld [vmem:[%s2027_s5 + $0x64] sm:$0xf]  ;;  %104 = vst [vmem:[#allocation2 + $0x5c] sm:$0xff] %v103_v18   ;;  %v119_v24 = vld [vmem:[%s2027_s5 + $0x7c] sm:$0xff]  }
  0x1f   :  { %108 = vst [vmem:[#allocation2 + $0x64] sm:$0xf] %v107_v19  ;;  %110 = vst [vmem:[#allocation2 + $0x68] sm:$0xf] %v109_v20  ;;  %v115_v22 = vld [vmem:[%s2027_s5 + $0x78] sm:$0xf] }
  0x20   :  { %v117_v23 = vld [vmem:[%s2027_s5 + $0x74] sm:$0xf]  ;;  %112 = vst [vmem:[#allocation2 + $0x6c] sm:$0xff] %v111_v21   ;;  %116 = vst [vmem:[#allocation2 + $0x74] sm:$0xf] %v115_v22  ;;  %v127_v27 = vld [vmem:[%s2027_s5 + $0x8c] sm:$0xff]  }
  0x21   :  { %118 = vst [vmem:[#allocation2 + $0x78] sm:$0xf] %v117_v23  ;;  %v123_v25 = vld [vmem:[%s2027_s5 + $0x88] sm:$0xf]  ;;  %v125_v26 = vld [vmem:[%s2027_s5 + $0x84] sm:$0xf] }
  0x22   :  { %120 = vst [vmem:[#allocation2 + $0x7c] sm:$0xff] %v119_v24   ;;  %124 = vst [vmem:[#allocation2 + $0x84] sm:$0xf] %v123_v25  ;;  %v131_v28 = vld [vmem:[%s2027_s5 + $0x98] sm:$0xf]  ;;  %v135_v30 = vld [vmem:[%s2027_s5 + $0x9c] sm:$0xff]  }
  0x23   :  { %126 = vst [vmem:[#allocation2 + $0x88] sm:$0xf] %v125_v26  ;;  %v133_v29 = vld [vmem:[%s2027_s5 + $0x94] sm:$0xf]  ;;  %128 = vst [vmem:[#allocation2 + $0x8c] sm:$0xff] %v127_v27   ;;  %v143_v33 = vld [vmem:[%s2027_s5 + $0xac] sm:$0xff]  }
  0x24   :  { %132 = vst [vmem:[#allocation2 + $0x94] sm:$0xf] %v131_v28  ;;  %134 = vst [vmem:[#allocation2 + $0x98] sm:$0xf] %v133_v29  ;;  %v139_v31 = vld [vmem:[%s2027_s5 + $0xa8] sm:$0xf] }
  0x25   :  { %v141_v32 = vld [vmem:[%s2027_s5 + $0xa4] sm:$0xf]  ;;  %136 = vst [vmem:[#allocation2 + $0x9c] sm:$0xff] %v135_v30   ;;  %140 = vst [vmem:[#allocation2 + $0xa4] sm:$0xf] %v139_v31  ;;  %v151_v36 = vld [vmem:[%s2027_s5 + $0xbc] sm:$0xff]  }
  0x26   :  { %142 = vst [vmem:[#allocation2 + $0xa8] sm:$0xf] %v141_v32  ;;  %v147_v34 = vld [vmem:[%s2027_s5 + $0xb8] sm:$0xf]  ;;  %v149_v35 = vld [vmem:[%s2027_s5 + $0xb4] sm:$0xf] }
  0x27   :  { %144 = vst [vmem:[#allocation2 + $0xac] sm:$0xff] %v143_v33   ;;  %148 = vst [vmem:[#allocation2 + $0xb4] sm:$0xf] %v147_v34  ;;  %v155_v37 = vld [vmem:[%s2027_s5 + $0xc8] sm:$0xf]  ;;  %v159_v39 = vld [vmem:[%s2027_s5 + $0xcc] sm:$0xff]  }
  0x28   :  { %150 = vst [vmem:[#allocation2 + $0xb8] sm:$0xf] %v149_v35  ;;  %v157_v38 = vld [vmem:[%s2027_s5 + $0xc4] sm:$0xf]  ;;  %152 = vst [vmem:[#allocation2 + $0xbc] sm:$0xff] %v151_v36   ;;  %v167_v42 = vld [vmem:[%s2027_s5 + $0xdc] sm:$0xff]  }
  0x29   :  { %156 = vst [vmem:[#allocation2 + $0xc4] sm:$0xf] %v155_v37  ;;  %158 = vst [vmem:[#allocation2 + $0xc8] sm:$0xf] %v157_v38  ;;  %v163_v40 = vld [vmem:[%s2027_s5 + $0xd8] sm:$0xf] }
  0x2a   :  { %v165_v41 = vld [vmem:[%s2027_s5 + $0xd4] sm:$0xf]  ;;  %160 = vst [vmem:[#allocation2 + $0xcc] sm:$0xff] %v159_v39   ;;  %164 = vst [vmem:[#allocation2 + $0xd4] sm:$0xf] %v163_v40  ;;  %v175_v45 = vld [vmem:[%s2027_s5 + $0xec] sm:$0xff]  }
  0x2b   :  { %166 = vst [vmem:[#allocation2 + $0xd8] sm:$0xf] %v165_v41  ;;  %v171_v43 = vld [vmem:[%s2027_s5 + $0xe8] sm:$0xf]  ;;  %v173_v44 = vld [vmem:[%s2027_s5 + $0xe4] sm:$0xf] }
  0x2c   :  { %168 = vst [vmem:[#allocation2 + $0xdc] sm:$0xff] %v167_v42   ;;  %172 = vst [vmem:[#allocation2 + $0xe4] sm:$0xf] %v171_v43  ;;  %v179_v46 = vld [vmem:[%s2027_s5 + $0xf8] sm:$0xf] }
  0x2d   :  { %174 = vst [vmem:[#allocation2 + $0xe8] sm:$0xf] %v173_v44  ;;  %v181_v47 = vld [vmem:[%s2027_s5 + $0xf4] sm:$0xf]  ;;  %176 = vst [vmem:[#allocation2 + $0xec] sm:$0xff] %v175_v45  }
  0x2e   :  { %180 = vst [vmem:[#allocation2 + $0xf4] sm:$0xf] %v179_v46  ;;  %182 = vst [vmem:[#allocation2 + $0xf8] sm:$0xf] %v181_v47  ;;  %v183_v48 = vld [vmem:[%s2027_s5 + $0xfc] sm:$0xf] }
  0x2f   :  { %184 = vst [vmem:[#allocation2 + $0xfc] sm:$0xf] %v183_v48 }
  0x30   :  { %343 = vsyncadd [#allocation3], 4096  ;;  %v1547_v49 = vld [vmem:[#allocation5 + $0x4] ss:$40 sps:$4 sm:$0xff]   ;;  %v1549_v50 = vld [vmem:[#allocation5] ss:$40 sps:$4 sm:$0xff]   ;;  %v590_v37 = vlaneseq }
  0x31   :  { %v1718_v51 = vmov 0.0   ;;  %v1719_v52 = vmov 0   ;;  %v1550_v53 = vld [vmem:[#allocation5 + $0x54] ss:$40 sps:$4 sm:$0xff]   ;;  %vm1720_vm0 = vmmov 0   ;;  %507 = vmatprep.subr.bf16.mxu0 %v1547_v49 }
  0x32   :  { %1500 = vmatprep.subr.bf16.mxu1 %v1718_v51  ;;  %539 = vmatprep.mubr.bf16.mxu0 %v1719_v52  ;;  %v1552_v54 = vld [vmem:[#allocation5 + $0x50] ss:$40 sps:$4 sm:$0xff]   ;;  %v1553_v55 = vld [vmem:[#allocation5 + $0xa4] ss:$40 sps:$4 sm:$0xff]   ;;  %v1555_v56 = vld [vmem:[#allocation5 + $0xa0] ss:$40 sps:$4 sm:$0xff]  }
  0x33   :  { %1516 = vmatprep.mubr.msk.bf16.mxu1 %vm1720_vm0, %v1718_v51  ;;  %508 = vmatpush1.bf16.msra.mxu0 %v1549_v50  ;;  %v1556_v57 = vld [vmem:[#allocation5 + $0xf4] ss:$40 sps:$4 sm:$0xff]   ;;  %v1558_v58 = vld [vmem:[#allocation5 + $0xf0] ss:$40 sps:$4 sm:$0xff]   ;;  %v1559_v60 = vld [vmem:[#allocation5 + $0x144] ss:$40 sps:$4 sm:$0xff]  }
  0x34   :  { %509 = vmatprep.subr.bf16.mxu0 %v1550_v53  ;;  %v1570_v59 = vld [vmem:[#allocation5 + $0x8] ss:$40 sps:$4 sm:$0xff]   ;;  %v1572_v61 = vld [vmem:[#allocation5 + $0x58] ss:$40 sps:$4 sm:$0xff]   ;;  %v1562_v63 = vld [vmem:[#allocation5 + $0x194] ss:$40 sps:$4 sm:$0xff]  }
  0x35   :  { %1501 = vmatpush3.bf16.msra.mxu1 %v1570_v59  ;;  %v1561_v62 = vld [vmem:[#allocation5 + $0x140] ss:$40 sps:$4 sm:$0xff]   ;;  %v1564_v1 = vld [vmem:[#allocation5 + $0x190] ss:$40 sps:$4 sm:$0xff]   ;;  %v1565_v2 = vld [vmem:[#allocation5 + $0x1e4] ss:$40 sps:$4 sm:$0xff]  }
  0x36   :  { %1502 = vmatprep.subr.bf16.mxu1 %v1718_v51  ;;  %v1576_v0 = vld [vmem:[#allocation5 + $0xa8] ss:$40 sps:$4 sm:$0xff]   ;;  %v1580_v3 = vld [vmem:[#allocation5 + $0xf8] ss:$40 sps:$4 sm:$0xff]   ;;  %v1568_v5 = vld [vmem:[#allocation5 + $0x234] ss:$40 sps:$4 sm:$0xff]  }
  0x37   :  { %510 = vmatpush1.bf16.msra.mxu0 %v1552_v54  ;;  %v1567_v4 = vld [vmem:[#allocation5 + $0x1e0] ss:$40 sps:$4 sm:$0xff]   ;;  %v1571_v7 = vld [vmem:[#allocation5 + $0x230] ss:$40 sps:$4 sm:$0xff]   ;;  %v1573_v11 = vld [vmem:[#allocation5 + $0xc] ss:$40 sps:$4 sm:$0xff]  }
  0x38   :  { %511 = vmatprep.subr.bf16.mxu0 %v1553_v55  ;;  %v1584_v6 = vld [vmem:[#allocation5 + $0x148] ss:$40 sps:$4 sm:$0xff]   ;;  %v1588_v9 = vld [vmem:[#allocation5 + $0x198] ss:$40 sps:$4 sm:$0xff]   ;;  %v1577_v14 = vld [vmem:[#allocation5 + $0x5c] ss:$40 sps:$4 sm:$0xff]  }
  0x39   :  { %1503 = vmatpush3.bf16.msra.mxu1 %v1572_v61  ;;  %v1575_v8 = vld [vmem:[#allocation5 + $0x10] ss:$40 sps:$4 sm:$0xff]   ;;  %v345_v10 = vld [vmem:[%s2023_s1] sm:$0x1]  ;;  %v1581_v17 = vld [vmem:[#allocation5 + $0xac] ss:$40 sps:$4 sm:$0xff]  }
  0x3a   :  { %1504 = vmatprep.subr.bf16.mxu1 %v1718_v51  ;;  %v1579_v12 = vld [vmem:[#allocation5 + $0x60] ss:$40 sps:$4 sm:$0xff]   ;;  %v1583_v15 = vld [vmem:[#allocation5 + $0xb0] ss:$40 sps:$4 sm:$0xff]   ;;  %v1585_v19 = vld [vmem:[#allocation5 + $0xfc] ss:$40 sps:$4 sm:$0xff]  }
  0x3b   :  { %512 = vmatpush1.bf16.msra.mxu0 %v1555_v56  ;;  %v1592_v13 = vld [vmem:[#allocation5 + $0x1e8] ss:$40 sps:$4 sm:$0xff]   ;;  %v1596_v16 = vld [vmem:[#allocation5 + $0x238] ss:$40 sps:$4 sm:$0xff]   ;;  %v1589_v21 = vld [vmem:[#allocation5 + $0x14c] ss:$40 sps:$4 sm:$0xff]  }
  0x3c   :  { %513 = vmatprep.subr.bf16.mxu0 %v1556_v57  ;;  %v1587_v18 = vld [vmem:[#allocation5 + $0x100] ss:$40 sps:$4 sm:$0xff]   ;;  %v1591_v20 = vld [vmem:[#allocation5 + $0x150] ss:$40 sps:$4 sm:$0xff]   ;;  %v1593_v23 = vld [vmem:[#allocation5 + $0x19c] ss:$40 sps:$4 sm:$0xff]  }
  0x3d   :  { %1505 = vmatpush3.bf16.msra.mxu1 %v1576_v0  ;;  %v1595_v22 = vld [vmem:[#allocation5 + $0x1a0] ss:$40 sps:$4 sm:$0xff]   ;;  %v1599_v24 = vld [vmem:[#allocation5 + $0x1f0] ss:$40 sps:$4 sm:$0xff]   ;;  %v1597_v25 = vld [vmem:[#allocation5 + $0x1ec] ss:$40 sps:$4 sm:$0xff]  }
  0x3e   :  { %1506 = vmatprep.subr.bf16.mxu1 %v1718_v51  ;;  %v1602_v26 = vld [vmem:[#allocation5 + $0x240] ss:$40 sps:$4 sm:$0xff]   ;;  %v1600_v27 = vld [vmem:[#allocation5 + $0x23c] ss:$40 sps:$4 sm:$0xff]   ;;  %v1950_v38 = vshrl.u32 %v590_v37, 7 }
  0x3f   :  { %514 = vmatpush1.bf16.msra.mxu0 %v1558_v58  ;;  %v346_v28 = vld [vmem:[%s2024_s2] sm:$0xf]  ;;  %v1603_v29 = vld [vmem:[#allocation5 + $0x24] ss:$40 sps:$4 sm:$0xff]   ;;  %v1604_v30 = vld [vmem:[#allocation5 + $0x74] ss:$40 sps:$4 sm:$0xff]  }
  0x40   :  { %515 = vmatprep.subr.bf16.mxu0 %v1559_v60  ;;  %v1605_v31 = vld [vmem:[#allocation5 + $0xc4] ss:$40 sps:$4 sm:$0xff]   ;;  %v1606_v32 = vld [vmem:[#allocation5 + $0x114] ss:$40 sps:$4 sm:$0xff]   ;;  %v1953_v39 = vsub.s32 0, %v1950_v38  ;;  %v596_v41 = vsub.s32 1, %v1950_v38 }
  0x41   :  { %1507 = vmatpush3.bf16.msra.mxu1 %v1580_v3  ;;  %v1607_v33 = vld [vmem:[#allocation5 + $0x164] ss:$40 sps:$4 sm:$0xff]   ;;  %v1608_v34 = vld [vmem:[#allocation5 + $0x1b4] ss:$40 sps:$4 sm:$0xff]   ;;  %v588_v40 = vld [vmem:[%s2026_s4] sm:$0x3] }
  0x42   :  { %1508 = vmatprep.subr.bf16.mxu1 %v1718_v51  ;;  %v1609_v35 = vld [vmem:[#allocation5 + $0x204] ss:$40 sps:$4 sm:$0xff]   ;;  %v1610_v36 = vld [vmem:[#allocation5 + $0x254] ss:$40 sps:$4 sm:$0xff]   ;;  %v593_v42 = vrot.slane %v588_v40, %v1953_v39  ;;  %v597_v43 = vrot.slane %v588_v40, %v596_v41  ;;  %v604_v57 = vld [vmem:[%s2026_s4 + $0x2] sm:$0x1] }
  0x43   :  { %516 = vmatpush1.bf16.msra.mxu0 %v1561_v62  ;;  %v1395_v59 = vld [vmem:[%s2026_s4 + $0x3] ss:$0 sm:$0xff] }
  0x44   :  { %517 = vmatprep.subr.bf16.mxu0 %v1562_v63 }
  0x45   :  { %1509 = vmatpush3.bf16.msra.mxu1 %v1584_v6  ;;  %v1616_v6 = vld [vmem:[#allocation5 + $0x68] ss:$40 sps:$4 sm:$0xff]  }
  0x46   :  { %1510 = vmatprep.subr.bf16.mxu1 %v1718_v51 }
  0x47   :  { %518 = vmatpush1.bf16.msra.mxu0 %v1564_v1 }
  0x48   :  { %519 = vmatprep.subr.bf16.mxu0 %v1565_v2 }
  0x49   :  { %1511 = vmatpush3.bf16.msra.mxu1 %v1588_v9  ;;  %v1617_v9 = vld [vmem:[#allocation5 + $0xb4] ss:$40 sps:$4 sm:$0xff]  }
  0x4a   :  { %1512 = vmatprep.subr.bf16.mxu1 %v1718_v51 }
  0x4b   :  { %520 = vmatpush1.bf16.msra.mxu0 %v1567_v4  ;;  %v1611_v4 = vld [vmem:[#allocation5 + $0x14] ss:$40 sps:$4 sm:$0xff]  }
  0x4c   :  { %521 = vmatprep.subr.bf16.mxu0 %v1568_v5  ;;  %v1613_v5 = vld [vmem:[#allocation5 + $0x18] ss:$40 sps:$4 sm:$0xff]  }
  0x4d   :  { %1513 = vmatpush3.bf16.msra.mxu1 %v1592_v13  ;;  %v1623_v13 = vld [vmem:[#allocation5 + $0x154] ss:$40 sps:$4 sm:$0xff]  }
  0x4e   :  { %1514 = vmatprep.subr.bf16.mxu1 %v1718_v51 }
  0x4f   :  { %522 = vmatpush1.bf16.msra.mxu0 %v1571_v7  ;;  %v1614_v7 = vld [vmem:[#allocation5 + $0x64] ss:$40 sps:$4 sm:$0xff]  }
  0x50   :  { %702 = vmatprep.subr.bf16.mxu0 %v1575_v8  ;;  %v1619_v8 = vld [vmem:[#allocation5 + $0xb8] ss:$40 sps:$4 sm:$0xff]  }
  0x51   :  { %1515 = vmatpush3.bf16.msra.mxu1 %v1596_v16  ;;  %v1631_v16 = vld [vmem:[#allocation5 + $0x1f8] ss:$40 sps:$4 sm:$0xff]  }
  0x52   :  { %540 = vmatmul.mubr.bf16.vlgmr.msra.gmra.mrb[0].mxu0 %v345_v10  ;;  %1520 = vmatprep.subr.bf16.mxu1 %v1718_v51 }
  0x53   :  { %703 = vmatpush1.bf16.msra.mxu0 %v1573_v11  ;;  %734 = vmatprep.mubr.bf16.mxu0 %v1719_v52  ;;  %v1620_v11 = vld [vmem:[#allocation5 + $0x104] ss:$40 sps:$4 sm:$0xff]  }
  0x54   :  { %704 = vmatprep.subr.bf16.mxu0 %v1579_v12  ;;  %1517 = vmatmul.mubr.bf16.vlgmr.msra.gmra.mrb[0].mxu1 %v345_v10  ;;  %v1622_v10 = vld [vmem:[#allocation5 + $0x108] ss:$40 sps:$4 sm:$0xff]   ;;  %v1625_v12 = vld [vmem:[#allocation5 + $0x158] ss:$40 sps:$4 sm:$0xff]  }
  0x55   :  { %1536 = vmatprep.mubr.msk.bf16.mxu1 %vm1720_vm0, %v1718_v51  ;;  %1521 = vmatpush3.bf16.msra.mxu1 %v1603_v29 }
  0x56   :  { %1522 = vmatprep.subr.bf16.mxu1 %v1718_v51 }
  0x57   :  { %705 = vmatpush1.bf16.msra.mxu0 %v1577_v14  ;;  %v1628_v14 = vld [vmem:[#allocation5 + $0x1a8] ss:$40 sps:$4 sm:$0xff]  }
  0x58   :  { %706 = vmatprep.subr.bf16.mxu0 %v1583_v15  ;;  %v1626_v15 = vld [vmem:[#allocation5 + $0x1a4] ss:$40 sps:$4 sm:$0xff]  }
  0x59   :  { %1523 = vmatpush3.bf16.msra.mxu1 %v1604_v30 }
  0x5a   :  { %1524 = vmatprep.subr.bf16.mxu1 %v1718_v51 }
  0x5b   :  { %707 = vmatpush1.bf16.msra.mxu0 %v1581_v17  ;;  %v1629_v17 = vld [vmem:[#allocation5 + $0x1f4] ss:$40 sps:$4 sm:$0xff]  }
  0x5c   :  { %708 = vmatprep.subr.bf16.mxu0 %v1587_v18  ;;  %v1634_v18 = vld [vmem:[#allocation5 + $0x248] ss:$40 sps:$4 sm:$0xff]  }
  0x5d   :  { %1525 = vmatpush3.bf16.msra.mxu1 %v1605_v31 }
  0x5e   :  { %1526 = vmatprep.subr.bf16.mxu1 %v1718_v51 }
  0x5f   :  { %709 = vmatpush1.bf16.msra.mxu0 %v1585_v19  ;;  %v1632_v19 = vld [vmem:[#allocation5 + $0x244] ss:$40 sps:$4 sm:$0xff]  }
  0x60   :  { %710 = vmatprep.subr.bf16.mxu0 %v1591_v20  ;;  %v871_v20 = vstv %s2022_s0 }
  0x61   :  { %1527 = vmatpush3.bf16.msra.mxu1 %v1606_v32  ;;  %vm872_vm1 = vcmp.lt.s32.totalorder %v1950_v38, %v871_v20 }
  0x62   :  { %1528 = vmatprep.subr.bf16.mxu1 %v1718_v51 }
  0x63   :  { %711 = vmatpush1.bf16.msra.mxu0 %v1589_v21 }
  0x64   :  { %712 = vmatprep.subr.bf16.mxu0 %v1595_v22 }
  0x65   :  { %1529 = vmatpush3.bf16.msra.mxu1 %v1607_v33 }
  0x66   :  { %1530 = vmatprep.subr.bf16.mxu1 %v1718_v51 }
  0x67   :  { %713 = vmatpush1.bf16.msra.mxu0 %v1593_v23 }
  0x68   :  { %714 = vmatprep.subr.bf16.mxu0 %v1599_v24 }
  0x69   :  { %1531 = vmatpush3.bf16.msra.mxu1 %v1608_v34  ;;  %v1396_v34 = vld [vmem:[%s2026_s4 + $0x4] ss:$0 sm:$0xff] }
  0x6a   :  { %1532 = vmatprep.subr.bf16.mxu1 %v1718_v51 }
  0x6b   :  { %715 = vmatpush1.bf16.msra.mxu0 %v1597_v25 }
  0x6c   :  { %716 = vmatprep.subr.bf16.mxu0 %v1602_v26 }
  0x6d   :  { %1533 = vmatpush3.bf16.msra.mxu1 %v1609_v35 }
  0x6e   :  { %1534 = vmatprep.subr.bf16.mxu1 %v1718_v51 }
  0x6f   :  { %717 = vmatpush1.bf16.msra.mxu0 %v1600_v27 }
  0x70   :  { %995 = vmatprep.subr.bf16.mxu0 %v1613_v5 }
  0x71   :  { %1535 = vmatpush3.bf16.msra.mxu1 %v1610_v36 }
  0x72   :  { %735 = vmatmul.mubr.bf16.vlgmr.msra.gmra.mrb[4].mxu0 %v346_v28 }
  0x73   :  { %1027 = vmatprep.mubr.bf16.mxu0 %v1719_v52  ;;  %996 = vmatpush1.bf16.msra.mxu0 %v1611_v4 }
  0x74   :  { %997 = vmatprep.subr.bf16.mxu0 %v1616_v6 }
  0x77   :  { %998 = vmatpush1.bf16.msra.mxu0 %v1614_v7 }
  0x78   :  { %999 = vmatprep.subr.bf16.mxu0 %v1619_v8 }
  0x7b   :  { %1000 = vmatpush1.bf16.msra.mxu0 %v1617_v9 }
  0x7c   :  { %1001 = vmatprep.subr.bf16.mxu0 %v1622_v10 }
  0x7f   :  { %1002 = vmatpush1.bf16.msra.mxu0 %v1620_v11 }
  0x80   :  { %1003 = vmatprep.subr.bf16.mxu0 %v1625_v12 }
  0x83   :  { %1004 = vmatpush1.bf16.msra.mxu0 %v1623_v13 }
  0x84   :  { %1005 = vmatprep.subr.bf16.mxu0 %v1628_v14 }
  0x87   :  { %1006 = vmatpush1.bf16.msra.mxu0 %v1626_v15 }
  0x88   :  { %1007 = vmatprep.subr.bf16.mxu0 %v1631_v16 }
  0x8b   :  { %1008 = vmatpush1.bf16.msra.mxu0 %v1629_v17 }
  0x8c   :  { %1009 = vmatprep.subr.bf16.mxu0 %v1634_v18 }
  0x8f   :  { %1010 = vmatpush1.bf16.msra.mxu0 %v1632_v19 }
 0x125   :  { %v541_v44 = vpop.f32.mrb[0].mxu0 }
 0x126   :  { %v1962_v45 = vadd.f32 %v593_v42, %v541_v44  ;;  %v543_v46 = vpop.f32.mrb[1].mxu0 }
 0x127   :  { %v1964_v47 = vadd.f32 %v597_v43, %v543_v46  ;;  %v545_v48 = vpop.f32.mrb[2].mxu0  ;;  %v582_v53 = vpop.f32.mrb[0].mxu1 }
 0x128   :  { %v602_v49 = vmax.f32 %v1962_v45, 0.0  ;;  %v546_v50 = vpop.f32.mrb[3].mxu0  ;;  %v1518_v54 = vpop.f32.mrb[1].mxu1  ;;  %v605_v58 = vadd.f32 %v604_v57, %v582_v53 }
 0x129   :  { %v603_v51 = vmax.f32 %v1964_v47, 0.0  ;;  %v585_v55 = vpop.f32.mrb[2].mxu1 }
 0x12a   :  { %v1519_v56 = vpop.f32.mrb[3].mxu1  ;;  %v762_v60 = vrot.slane %v605_v58, %v1953_v39 }
 0x145   :  { %v736_v61 = vpop.f32.mrb[4].mxu0 }
 0x146   :  { %v750_v62 = vadd.f32 %v1395_v59, %v736_v61  ;;  %v738_v63 = vpop.f32.mrb[5].mxu0 }
 0x147   :  { %v740_v0 = vpop.f32.mrb[6].mxu0  ;;  %v758_v35 = vadd.f32 %v1396_v34, %v738_v63 }
 0x148   :  { %v763_v1 = vmul.f32 %v762_v60, %v750_v62  ;;  %v741_v2 = vpop.f32.mrb[7].mxu0 }
 0x14a   :  { %v764_v3 = vpack.c.bf16 %v763_v1, %v763_v1 }
 0x14c   :  { %1537 = vmatmul.mubr.bf16.vlgmr.msra.gmra.mrb[4].mxu1 %v764_v3 }
 0x21f   :  { %v863_v21 = vpop.f32.mrb[4].mxu1 }
 0x220   :  { %v873_v22 = vsel %vm872_vm1, %v863_v21, -1e+30  ;;  %v1538_v23 = vpop.f32.mrb[5].mxu1 }
 0x221   :  { %v874_v24 = vrot.slane %v873_v22, 4  ;;  %v866_v25 = vpop.f32.mrb[6].mxu1 }
 0x222   :  { %v1539_v26 = vpop.f32.mrb[7].mxu1 }
 0x223   :  { %v875_v27 = vmax.f32 %v873_v22, %v874_v24 }
 0x225   :  { %v876_v28 = vrot.slane %v875_v27, 2 }
 0x227   :  { %v877_v29 = vmax.f32 %v875_v27, %v876_v28 }
 0x229   :  { %v878_v30 = vrot.slane %v877_v29, 1 }
 0x22b   :  { %v879_v31 = vmax.f32 %v877_v29, %v878_v30 }
 0x22d   :  { %v880_v32 = vsub.f32 %v873_v22, %v879_v31 }
 0x22f   :  { %v881_v33 = vmul.f32 1.442695, %v880_v32 }
 0x231   :  { %1635 = vpow2.f32 %v881_v33 }
 0x23b   :  { %v1636_v36 = vpop.eup %1635 }
 0x23c   :  { %v883_v37 = vrot.slane %v1636_v36, 4  ;;  %v889_v40 = vmul.f32 %v1636_v36, %v758_v35 }
 0x23e   :  { %v884_v42 = vadd.f32 %v1636_v36, %v883_v37  ;;  %v890_v43 = vrot.slane %v889_v40, 4 }
 0x240   :  { %v885_v44 = vrot.slane %v884_v42, 2  ;;  %v891_v46 = vadd.f32 %v890_v43, %v889_v40 }
 0x242   :  { %v886_v48 = vadd.f32 %v885_v44, %v884_v42  ;;  %v892_v53 = vrot.slane %v891_v46, 2 }
 0x244   :  { %v887_v50 = vrot.slane %v886_v48, 1  ;;  %v893_v55 = vadd.f32 %v892_v53, %v891_v46 }
 0x246   :  { %v888_v54 = vadd.f32 %v887_v50, %v886_v48  ;;  %v894_v56 = vrot.slane %v893_v55, 1 }
 0x248   :  { %1637 = vrcp.f32 %v888_v54  ;;  %v895_v57 = vadd.f32 %v894_v56, %v893_v55 }
 0x252   :  { %v1638_v58 = vpop.eup %1637 }
 0x253   :  { %v897_v59 = vmul.f32 %v1638_v58, %v895_v57 }
 0x255   :  { %v914_v60 = vpack.c.bf16 %v897_v59, %v897_v59 }
 0x257   :  { %1028 = vmatmul.mubr.bf16.vlgmr.msra.gmra.mrb[8].mxu0 %v914_v60 }
 0x32a   :  { %v1982_v61 = vpop.f32.mrb[8].mxu0 }
 0x32b   :  { %v1984_v62 = vpop.f32.mrb[9].mxu0 }
 0x32c   :  { %v1033_v63 = vpop.f32.mrb[10].mxu0 }
 0x32d   :  { %v1034_v0 = vpop.f32.mrb[11].mxu0 }
 0x32e   :  { %1711 = dma.done.wait [#allocation3], 4096 }
 0x32f   :  { %1712 = vsyncadd [#allocation3], 4294963200  ;;  %v1057_v1 = vpack.c.bf16 %v603_v51, %v603_v51  ;;  %1230 = vmatprep.mubr.bf16.mxu0 %v1719_v52  ;;  %v1048_v2 = vld [vmem:[#allocation2 + $0x80] sm:$0xff]  ;;  %v1049_v4 = vld [vmem:[#allocation2 + $0x90] sm:$0xff]  ;;  %v1056_v27 = vpack.c.bf16 %v602_v49, %v602_v49  ;;  %s1721_s30 = smov [#allocation8]  }
 0x330   :  { %v1040_v3 = vld [vmem:[#allocation2] sm:$0xff]  ;;  %1456 = vmatprep.subr.bf16.mxu1 %v1048_v2  ;;  %v1041_v5 = vld [vmem:[#allocation2 + $0x10] sm:$0xff]  ;;  %v1263_v32 = vld [vmem:[#allocation2 + $0x88] sm:$0xff]  ;;  %s1324_s8 = sshll.u32 %s1721_s30, 4  ;;  %s1325_s8 = int_to_ptr.vmem [resolvable:$true] %s1324_s8 }
 0x331   :  { %1091 = vmatprep.mubr.bf16.mxu1 %v1057_v1  ;;  %1457 = vmatpush3.bf16.msra.mxu1 %v1040_v3  ;;  %v1050_v6 = vld [vmem:[#allocation2 + $0xa0] sm:$0xff]  ;;  %v1642_v10 = vld [vmem:[#allocation5 + $0x70] ss:$40 sps:$4 sm:$0xff]   ;;  %v1644_v51 = vld [vmem:[#allocation5 + $0x6c] ss:$40 sps:$4 sm:$0xff]   ;;  %s1687_s9 = scalar_lea.vmem %s1325_s8, 16  ;;  %p1692_p9 = scmp.lt.s32.totalorder %s1325_s8, %s1325_s8 }
 0x332   :  { %1458 = vmatprep.subr.bf16.mxu1 %v1049_v4  ;;  %v1639_v7 = vld [vmem:[#allocation5 + $0x20] ss:$40 sps:$4 sm:$0xff]   ;;  %v1641_v8 = vld [vmem:[#allocation5 + $0x1c] ss:$40 sps:$4 sm:$0xff]   ;;  %v1051_v47 = vld [vmem:[#allocation2 + $0xb0] sm:$0xff]  ;;  %p1688_p8 = scmp.ne.s32.totalorder %s1325_s8, %s1687_s9  ;;  %s1691_s10 = scalar_lea.vmem %s1325_s8, 32 }
 0x333   :  { %v1042_v9 = vld [vmem:[#allocation2 + $0x20] sm:$0xff]  ;;  %1198 = vmatprep.subr.bf16.mxu0 %v1639_v7  ;;  %v1043_v11 = vld [vmem:[#allocation2 + $0x30] sm:$0xff]  ;;  %v1255_v33 = vld [vmem:[#allocation2 + $0x8] sm:$0xff]  ;;  %p1693_p10 = scmp.lt.s32.totalorder %s1691_s10, %s1687_s9 }
 0x334   :  { %1199 = vmatpush1.bf16.msra.mxu0 %v1641_v8  ;;  %v1645_v52 = vld [vmem:[#allocation5 + $0xc0] ss:$40 sps:$4 sm:$0xff]   ;;  %v1647_v13 = vld [vmem:[#allocation5 + $0xbc] ss:$40 sps:$4 sm:$0xff]   ;;  %v1648_v14 = vld [vmem:[#allocation5 + $0x110] ss:$40 sps:$4 sm:$0xff]  }
 0x335   :  { %1459 = vmatpush3.bf16.msra.mxu1 %v1041_v5  ;;  %1200 = vmatprep.subr.bf16.mxu0 %v1642_v10  ;;  %v1052_v12 = vld [vmem:[#allocation2 + $0xc0] sm:$0xff]  ;;  %v1053_v16 = vld [vmem:[#allocation2 + $0xd0] sm:$0xff]  ;;  %v1264_v34 = vld [vmem:[#allocation2 + $0x98] sm:$0xff]  ;;  %p1694_p11 = por %p1693_p10, %p1692_p9 }
 0x336   :  { %1460 = vmatprep.subr.bf16.mxu1 %v1050_v6  ;;  %v1044_v15 = vld [vmem:[#allocation2 + $0x40] sm:$0xff]  ;;  %v1650_v17 = vld [vmem:[#allocation5 + $0x10c] ss:$40 sps:$4 sm:$0xff]   ;;  %v1654_v22 = vld [vmem:[#allocation5 + $0x1b0] ss:$40 sps:$4 sm:$0xff]  }
 0x337   :  { %v1651_v18 = vld [vmem:[#allocation5 + $0x160] ss:$40 sps:$4 sm:$0xff]   ;;  %v1045_v19 = vld [vmem:[#allocation2 + $0x50] sm:$0xff]  ;;  %v1653_v21 = vld [vmem:[#allocation5 + $0x15c] ss:$40 sps:$4 sm:$0xff]   ;;  %p1695_p12 = pnand %p1694_p11, %p1688_p8 }
 0x338   :  { %1201 = vmatpush1.bf16.msra.mxu0 %v1644_v51  ;;  %v1054_v20 = vld [vmem:[#allocation2 + $0xe0] sm:$0xff]  ;;  %v1055_v24 = vld [vmem:[#allocation2 + $0xf0] sm:$0xff]  ;;  %v1256_v45 = vld [vmem:[#allocation2 + $0x18] sm:$0xff] }
 0x339   :  { %1461 = vmatpush3.bf16.msra.mxu1 %v1042_v9  ;;  %1202 = vmatprep.subr.bf16.mxu0 %v1645_v52  ;;  %v1046_v23 = vld [vmem:[#allocation2 + $0x60] sm:$0xff]  ;;  %v1656_v25 = vld [vmem:[#allocation5 + $0x1ac] ss:$40 sps:$4 sm:$0xff]   ;;  %v1660_v30 = vld [vmem:[#allocation5 + $0x250] ss:$40 sps:$4 sm:$0xff]  }
 0x33a   :  { %1462 = vmatprep.subr.bf16.mxu1 %v1051_v47  ;;  %v1047_v26 = vld [vmem:[#allocation2 + $0x70] sm:$0xff]  ;;  %v1657_v28 = vld [vmem:[#allocation5 + $0x200] ss:$40 sps:$4 sm:$0xff]   ;;  %v1659_v29 = vld [vmem:[#allocation5 + $0x1fc] ss:$40 sps:$4 sm:$0xff]  }
 0x33b   :  { %v1662_v31 = vld [vmem:[#allocation5 + $0x24c] ss:$40 sps:$4 sm:$0xff]   ;;  %v1266_v36 = vld [vmem:[#allocation2 + $0xb8] sm:$0xff]  ;;  %v1058_v46 = vld [vmem:[%s2026_s4 + $0x5] sm:$0x1] }
 0x33c   :  { %1203 = vmatpush1.bf16.msra.mxu0 %v1647_v13  ;;  %v1265_v35 = vld [vmem:[#allocation2 + $0xa8] sm:$0xff]  ;;  %v1258_v37 = vld [vmem:[#allocation2 + $0x38] sm:$0xff]  ;;  %v1239_v1 = vld [vmem:[%s2026_s4 + $0x6] sm:$0x3] }
 0x33d   :  { %1463 = vmatpush3.bf16.msra.mxu1 %v1043_v11  ;;  %1204 = vmatprep.subr.bf16.mxu0 %v1648_v14  ;;  %v1257_v49 = vld [vmem:[#allocation2 + $0x28] sm:$0xff]  ;;  %v1268_v43 = vld [vmem:[#allocation2 + $0xd8] sm:$0xff]  ;;  %v1244_v2 = vrot.slane %v1239_v1, %v1953_v39  ;;  %v1248_v4 = vrot.slane %v1239_v1, %v596_v41 }
 0x33e   :  { %1464 = vmatprep.subr.bf16.mxu1 %v1052_v12  ;;  %v1267_v40 = vld [vmem:[#allocation2 + $0xc8] sm:$0xff]  ;;  %v1260_v58 = vld [vmem:[#allocation2 + $0x58] sm:$0xff] }
 0x33f   :  { %v1259_v42 = vld [vmem:[#allocation2 + $0x48] sm:$0xff]  ;;  %v1270_v63 = vld [vmem:[#allocation2 + $0xf8] sm:$0xff] }
 0x340   :  { %1205 = vmatpush1.bf16.msra.mxu0 %v1650_v17  ;;  %v1269_v59 = vld [vmem:[#allocation2 + $0xe8] sm:$0xff]  ;;  %v1262_v0 = vld [vmem:[#allocation2 + $0x78] sm:$0xff] }
 0x341   :  { %1465 = vmatpush3.bf16.msra.mxu1 %v1044_v15  ;;  %1206 = vmatprep.subr.bf16.mxu0 %v1651_v18  ;;  %v1261_v60 = vld [vmem:[#allocation2 + $0x68] sm:$0xff] }
 0x342   :  { %1466 = vmatprep.subr.bf16.mxu1 %v1053_v16 }
 0x344   :  { %1207 = vmatpush1.bf16.msra.mxu0 %v1653_v21 }
 0x345   :  { %1467 = vmatpush3.bf16.msra.mxu1 %v1045_v19  ;;  %1208 = vmatprep.subr.bf16.mxu0 %v1654_v22 }
 0x346   :  { %1468 = vmatprep.subr.bf16.mxu1 %v1054_v20 }
 0x348   :  { %1209 = vmatpush1.bf16.msra.mxu0 %v1656_v25 }
 0x349   :  { %1469 = vmatpush3.bf16.msra.mxu1 %v1046_v23  ;;  %1210 = vmatprep.subr.bf16.mxu0 %v1657_v28 }
 0x34a   :  { %1470 = vmatprep.subr.bf16.mxu1 %v1055_v24 }
 0x34c   :  { %1211 = vmatpush1.bf16.msra.mxu0 %v1659_v29 }
 0x34d   :  { %1471 = vmatpush3.bf16.msra.mxu1 %v1047_v26  ;;  %1212 = vmatprep.subr.bf16.mxu0 %v1660_v30 }
 0x34e   :  { %1478 = vmatprep.subr.bf16.mxu1 %v1263_v32 }
 0x350   :  { %1092 = vmatmul.mubr.bf16.vlgmr.msra.gmra.mrb[8].mxu1 %v1056_v27  ;;  %1213 = vmatpush1.bf16.msra.mxu0 %v1662_v31 }
 0x351   :  { %1479 = vmatpush3.bf16.msra.mxu1 %v1255_v33 }
 0x352   :  { %1480 = vmatprep.subr.bf16.mxu1 %v1264_v34 }
 0x355   :  { %1481 = vmatpush3.bf16.msra.mxu1 %v1256_v45 }
 0x356   :  { %1482 = vmatprep.subr.bf16.mxu1 %v1265_v35 }
 0x359   :  { %1483 = vmatpush3.bf16.msra.mxu1 %v1257_v49 }
 0x35a   :  { %1484 = vmatprep.subr.bf16.mxu1 %v1266_v36 }
 0x35d   :  { %1485 = vmatpush3.bf16.msra.mxu1 %v1258_v37 }
 0x35e   :  { %1486 = vmatprep.subr.bf16.mxu1 %v1267_v40 }
 0x361   :  { %1487 = vmatpush3.bf16.msra.mxu1 %v1259_v42 }
 0x362   :  { %1488 = vmatprep.subr.bf16.mxu1 %v1268_v43 }
 0x365   :  { %1489 = vmatpush3.bf16.msra.mxu1 %v1260_v58 }
 0x366   :  { %1490 = vmatprep.subr.bf16.mxu1 %v1269_v59 }
 0x369   :  { %1491 = vmatpush3.bf16.msra.mxu1 %v1261_v60 }
 0x36a   :  { %1492 = vmatprep.subr.bf16.mxu1 %v1270_v63 }
 0x36d   :  { %1493 = vmatpush3.bf16.msra.mxu1 %v1262_v0 }
 0x423   :  { %v1472_v44 = vpop.f32.mrb[8].mxu1 }
 0x424   :  { %v1473_v48 = vpop.f32.mrb[9].mxu1 }
 0x425   :  { %v1474_v50 = vadd.f32 %v1473_v48, %v1472_v44  ;;  %v1475_v53 = vpop.f32.mrb[10].mxu1 }
 0x426   :  { %v1476_v54 = vpop.f32.mrb[11].mxu1 }
 0x427   :  { %v1094_v55 = vadd.f32 %v1474_v50, %v1058_v46 }
 0x429   :  { %v1099_v56 = vmax.f32 %v1094_v55, 0.0 }
 0x42b   :  { %1100 = vst [vmem:[#allocation8] sm:$0x1] %v1099_v56  ;;  %v1117_v57 = vpack.c.bf16 %v1099_v56, %v1099_v56 }
 0x42d   :  { %1231 = vmatmul.mubr.bf16.vlgmr.msra.gmra.mrb[12].mxu0 %v1117_v57 }
 0x500   :  { %v1232_v3 = vpop.f32.mrb[12].mxu0 }
 0x501   :  { %v1233_v5 = vadd.f32 %v1232_v3, %v1982_v61  ;;  %v1234_v6 = vpop.f32.mrb[13].mxu0 }
 0x502   :  { %v1235_v7 = vadd.f32 %v1234_v6, %v1984_v62  ;;  %v1236_v8 = vpop.f32.mrb[14].mxu0 }
 0x503   :  { %v1251_v9 = vadd.f32 %v1244_v2, %v1233_v5  ;;  %v1237_v10 = vpop.f32.mrb[15].mxu0 }
 0x504   :  { %v1252_v47 = vadd.f32 %v1248_v4, %v1235_v7 }
 0x505   :  { %v1253_v51 = vmax.f32 %v1251_v9, 0.0 }
 0x506   :  { %v1254_v52 = vmax.f32 %v1252_v47, 0.0 }
 0x507   :  { %v1271_v12 = vpack.c.bf16 %v1253_v51, %v1253_v51 }
 0x508   :  { %v1272_v11 = vpack.c.bf16 %v1254_v52, %v1254_v52 }
 0x50a   :  { %1306 = vmatprep.mubr.bf16.mxu1 %v1272_v11 }
 0x50b   :  { %1307 = vmatmul.mubr.bf16.vlgmr.msra.gmra.mrb[12].mxu1 %v1271_v12 }
 0x50c   :  { %1698 = shalt.err (!%p1695_p12)
}
 0x50d   :  { %s1699_s13 = scalar_lea.hbm %s2029_s7, 16 }
 0x50e   :  { %p1700_p13 = scmp.ne.s32.totalorder %s2029_s7, %s1699_s13  ;;  %p1703_p0 = scmp.lt.u32.totalorder %s1699_s13, %s2029_s7 }
 0x510   :  { %p1705_p1 = pnand %p1703_p0, %p1700_p13 }
 0x512   :  { %1708 = shalt.err (!%p1705_p1)
}
 0x513   :  { %1327 = dma.vmem_to_hbm [thread:$0]  %s1325_s8, 16, %s2029_s7, [#allocation7]   ;;  %v1273_v39 = vld [vmem:[%s2026_s4 + $0x8] sm:$0x1] }
 0x5de   :  { %v1494_v38 = vpop.f32.mrb[12].mxu1 }
 0x5df   :  { %v1495_v41 = vpop.f32.mrb[13].mxu1 }
 0x5e0   :  { %v1496_v61 = vadd.f32 %v1495_v41, %v1494_v38  ;;  %v1497_v62 = vpop.f32.mrb[14].mxu1 }
 0x5e1   :  { %v1498_v13 = vpop.f32.mrb[15].mxu1 }
 0x5e2   :  { %v1309_v14 = vadd.f32 %v1496_v61, %v1273_v39 }
 0x5e4   :  { %1663 = vtanh.f32 %v1309_v14 }
 0x5ee   :  { %v1664_v15 = vpop.eup %1663 }
 0x5ef   :  { %1315 = vst [vmem:[%s2028_s6] sm:$0x1] %v1664_v15 }
 0x5f0   :  { %1713 = dma.done.wait [#allocation7], 16  }
 0x5f1   :  { %1714 = vsyncadd [#allocation7], 4294967280 }
 0x5f2   :  { %1333 = vsyncpa [#allocation6], 1 }
 0x5f3   :  { %1334 = vsyncpa [#allocation7], 1 }
 0x5f4   :  { %1335 = vsyncmov [#allocation3] }
 0x5f7   :  { %s1336_s7 = vpop.sfrf %1335 }
 0x5f8   :  { %p1437_p2 = scmp.ne.s32.totalorder %s1336_s7, 0 }
 0x5fa   :  { %1340 = shalt.err (%p1437_p2)  }

</bundles_post_ra>
